<compile_context>
chip_gen: v5e
topology: v5e:2x2
jax: 0.10.0
libtpu: 0.0.40
codegen_flags: <defaults>
</compile_context>

<pallas_src>
import jax
import jax.numpy as jnp
from jax.experimental import pallas as pl
from jax.experimental.pallas import tpu as pltpu

_EPS = 1e-5
_QGELU = 1.702


def simplenet_kernel(x_ref, w_ref, b_ref, g_ref, be_ref, o_ref, acc_ref):
    # Grid: (j = output-feature tile, k = contraction tile). K axis is last.
    k = pl.program_id(1)

    @pl.when(k == 0)
    def _():
        acc_ref[...] = jnp.zeros_like(acc_ref)

    # x tile: (N, TK) bf16; w tile: (TN, TK) bf16 in PyTorch (out, in) layout.
    # Contract the "in" dims of both -> (N, TN), f32 accumulate on the MXU.
    acc_ref[...] += jax.lax.dot_general(
        x_ref[...], w_ref[...],
        dimension_numbers=(((1,), (1,)), ((), ())),
        preferred_element_type=jnp.float32)

    # Epilogue only once, after the full contraction.
    @pl.when(k == pl.num_programs(1) - 1)
    def _():
        y = acc_ref[...] + b_ref[...]                 # bias (1, TN) broadcasts
        # QuickGELU: y * sigmoid(1.702 * y)   (sigmoid -> EUP slot)
        y = y * jax.nn.sigmoid(_QGELU * y)

        # BatchNorm1d (training mode), single pass over the tile:
        #   mean = s1/n ; var = s2/n - mean^2 (biased)
        #   scale = gamma * rsqrt(var + eps) ; shift = beta - mean*scale
        inv_n = jnp.float32(1.0 / y.shape[0])
        s1 = jnp.sum(y, axis=0, keepdims=True)
        s2 = jnp.sum(y * y, axis=0, keepdims=True)
        mean = s1 * inv_n
        var = s2 * inv_n - mean * mean
        scale = g_ref[...] * jax.lax.rsqrt(var + _EPS)
        shift = be_ref[...] - mean * scale
        o_ref[...] = (y * scale + shift).astype(o_ref.dtype)


def simplenet_forward(x, w, b, gamma, beta, *, tn=128, tk=256):
    """x: (N, D) f32; w: (D, D) PyTorch (out, in) layout; b/gamma/beta: (D,)."""
    n, d = x.shape
    assert w.shape == (d, d)

    # Pad the feature dim to a lane-dense multiple of 128.  Padded input cols
    # are zero (no effect on the dot); padded output cols are sliced off below.
    dp = max(128, ((d + 127) // 128) * 128)
    pad = dp - d

    x_p = jnp.pad(x, ((0, 0), (0, pad))).astype(jnp.bfloat16)
    w_p = jnp.pad(w, ((0, pad), (0, pad))).astype(jnp.bfloat16)   # keep (out, in)
    b_p = jnp.pad(b, (0, pad)).reshape(1, dp).astype(jnp.float32)
    g_p = jnp.pad(gamma, (0, pad), constant_values=1.0).reshape(1, dp).astype(jnp.float32)
    be_p = jnp.pad(beta, (0, pad)).reshape(1, dp).astype(jnp.float32)

    tn = min(tn, dp)
    tk = min(tk, dp)
    grid = (dp // tn, dp // tk)   # (feature tiles, contraction tiles); K last

    out_p = pl.pallas_call(
        simplenet_kernel,
        out_shape=jax.ShapeDtypeStruct((n, dp), jnp.float32),
        grid_spec=pltpu.PrefetchScalarGridSpec(
            num_scalar_prefetch=0,
            grid=grid,
            in_specs=[
                pl.BlockSpec((n, tk), lambda j, k: (0, k)),    # x     (full batch)
                pl.BlockSpec((tn, tk), lambda j, k: (j, k)),   # W (out, in) tile
                pl.BlockSpec((1, tn), lambda j, k: (0, j)),    # linear bias
                pl.BlockSpec((1, tn), lambda j, k: (0, j)),    # bn gamma
                pl.BlockSpec((1, tn), lambda j, k: (0, j)),    # bn beta
            ],
            out_specs=pl.BlockSpec((n, tn), lambda j, k: (0, j)),
            scratch_shapes=[pltpu.VMEM((n, tn), jnp.float32)],
        ),
        compiler_params=pltpu.CompilerParams(
            dimension_semantics=("parallel", "arbitrary")),
    )(x_p, w_p, b_p, g_p, be_p)

    return out_p[:, :d]


if __name__ == "__main__":
    key = jax.random.PRNGKey(0)
    N, D = 8, 32                               # batch=8, input_dim=32

    kx, kw, kb = jax.random.split(key, 3)
    x = jax.random.normal(kx, (N, D), dtype=jnp.float32)

    # Deterministic "PyTorch-style" init: Linear weights/bias ~ U(-1/sqrt(D), 1/sqrt(D));
    # BatchNorm1d gamma=1, beta=0.
    bound = 1.0 / jnp.sqrt(jnp.float32(D))
    w = jax.random.uniform(kw, (D, D), minval=-bound, maxval=bound, dtype=jnp.float32)
    b = jax.random.uniform(kb, (D,), minval=-bound, maxval=bound, dtype=jnp.float32)
    gamma = jnp.ones((D,), dtype=jnp.float32)
    beta = jnp.zeros((D,), dtype=jnp.float32)

    out = simplenet_forward(x, w, b, gamma, beta)
    out = jax.block_until_ready(out)

    # Pure-JAX reference with matching bf16 matmul inputs / f32 accumulation.
    xb = x.astype(jnp.bfloat16)
    wb = w.astype(jnp.bfloat16)
    y_ref = jax.lax.dot_general(xb, wb, (((1,), (1,)), ((), ())),
                                preferred_element_type=jnp.float32) + b
    y_ref = y_ref * jax.nn.sigmoid(1.702 * y_ref)
    mu = jnp.mean(y_ref, axis=0, keepdims=True)
    var = jnp.mean((y_ref - mu) ** 2, axis=0, keepdims=True)
    ref = (y_ref - mu) / jnp.sqrt(var + 1e-5) * gamma + beta

    assert out.shape == (N, D), f"bad shape {out.shape}"
    assert jnp.allclose(out, ref, atol=2e-3, rtol=2e-3), "mismatch vs reference"

    print("KERNEL_OK")
</pallas_src>

<mosaic_0001>
module attributes {stable_mosaic.version = 11 : i64} {
  func.func @simplenet_kernel(%arg0: i32, %arg1: i32, %arg2: memref<8x128xbf16, #tpu.memory_space<vmem>>, %arg3: memref<128x128xbf16, #tpu.memory_space<vmem>>, %arg4: memref<1x128xf32, #tpu.memory_space<vmem>>, %arg5: memref<1x128xf32, #tpu.memory_space<vmem>>, %arg6: memref<1x128xf32, #tpu.memory_space<vmem>>, %arg7: memref<8x128xf32, #tpu.memory_space<vmem>>, %arg8: memref<8x128xf32, #tpu.memory_space<vmem>>) attributes {dimension_semantics = [#tpu.dimension_semantics<parallel>, #tpu.dimension_semantics<arbitrary>], iteration_bounds = array<i64: 1, 1>, scalar_prefetch = 0 : i64, scratch_operands = 1 : i64, tpu.core_type = #tpu.core_type<tc>, window_params = [{transform_indices = @transform_0, window_bounds = array<i64: 8, 128>}, {transform_indices = @transform_1, window_bounds = array<i64: 128, 128>}, {transform_indices = @transform_2, window_bounds = array<i64: 1, 128>}, {transform_indices = @transform_3, window_bounds = array<i64: 1, 128>}, {transform_indices = @transform_4, window_bounds = array<i64: 1, 128>}, {transform_indices = @transform_5, window_bounds = array<i64: 8, 128>}]} {
    %c0_i32 = arith.constant 0 : i32
    %0 = arith.cmpi eq, %arg1, %c0_i32 : i32
    %1 = arith.extui %0 : i1 to i32
    %c0_i32_0 = arith.constant 0 : i32
    %2 = arith.cmpi ne, %1, %c0_i32_0 : i32
    scf.if %2 {
      %cst_10 = arith.constant 0.000000e+00 : f32
      %12 = vector.broadcast %cst_10 : f32 to vector<8x128xf32>
      %c0_11 = arith.constant 0 : index
      %c0_12 = arith.constant 0 : index
      %13 = vector.load %arg8[%c0_11, %c0_12] : memref<8x128xf32, #tpu.memory_space<vmem>>, vector<8x128xf32>
      tpu.vector_store %arg8[%c0_11, %c0_12], %12 {strides = array<i32>} : memref<8x128xf32, #tpu.memory_space<vmem>>, vector<8x128xf32>,
    } else {
    }
    %c0 = arith.constant 0 : index
    %c0_1 = arith.constant 0 : index
    %3 = vector.load %arg8[%c0, %c0_1] : memref<8x128xf32, #tpu.memory_space<vmem>>, vector<8x128xf32>
    %c0_2 = arith.constant 0 : index
    %c0_3 = arith.constant 0 : index
    %4 = vector.load %arg2[%c0_2, %c0_3] : memref<8x128xbf16, #tpu.memory_space<vmem>>, vector<8x128xbf16>
    %c0_4 = arith.constant 0 : index
    %c0_5 = arith.constant 0 : index
    %5 = vector.load %arg3[%c0_4, %c0_5] : memref<128x128xbf16, #tpu.memory_space<vmem>>, vector<128x128xbf16>
    %cst = arith.constant dense<0.000000e+00> : vector<8x128xf32>
    %6 = tpu.matmul %4, %5, %cst {dimension_numbers = #tpu.dot_dimension_numbers<[1], [1], [0], [0], [0, 0, 1, 0], [], []>} : vector<8x128xbf16>, vector<128x128xbf16>, vector<8x128xf32> -> vector<8x128xf32>
    %7 = arith.addf %3, %6 : vector<8x128xf32>
    %c0_6 = arith.constant 0 : index
    %c0_7 = arith.constant 0 : index
    %8 = vector.load %arg8[%c0_6, %c0_7] : memref<8x128xf32, #tpu.memory_space<vmem>>, vector<8x128xf32>
    tpu.vector_store %arg8[%c0_6, %c0_7], %7 {strides = array<i32>} : memref<8x128xf32, #tpu.memory_space<vmem>>, vector<8x128xf32>,
    %c0_i32_8 = arith.constant 0 : i32
    %9 = arith.cmpi eq, %arg1, %c0_i32_8 : i32
    %10 = arith.extui %9 : i1 to i32
    %c0_i32_9 = arith.constant 0 : i32
    %11 = arith.cmpi ne, %10, %c0_i32_9 : i32
    scf.if %11 {
      %c0_10 = arith.constant 0 : index
      %c0_11 = arith.constant 0 : index
      %12 = vector.load %arg8[%c0_10, %c0_11] : memref<8x128xf32, #tpu.memory_space<vmem>>, vector<8x128xf32>
      %c0_12 = arith.constant 0 : index
      %c0_13 = arith.constant 0 : index
      %13 = vector.load %arg4[%c0_12, %c0_13] : memref<1x128xf32, #tpu.memory_space<vmem>>, vector<1x128xf32>
      %14 = vector.broadcast %13 : vector<1x128xf32> to vector<8x128xf32>
      %15 = arith.addf %12, %14 : vector<8x128xf32>
      %cst_14 = arith.constant 1.702000e+00 : f32
      %16 = vector.broadcast %cst_14 : f32 to vector<8x128xf32>
      %17 = arith.mulf %16, %15 : vector<8x128xf32>
      %18 = arith.negf %17 : vector<8x128xf32>
      %19 = math.exp %18 : vector<8x128xf32>
      %cst_15 = arith.constant 1.000000e+00 : f32
      %20 = vector.broadcast %cst_15 : f32 to vector<8x128xf32>
      %21 = arith.addf %20, %19 : vector<8x128xf32>
      %22 = arith.divf %20, %21 : vector<8x128xf32>
      %23 = arith.mulf %15, %22 : vector<8x128xf32>
      %cst_16 = arith.constant dense<0.000000e+00> : vector<128xf32>
      %24 = vector.multi_reduction <add>, %23, %cst_16 [0] : vector<8x128xf32> to vector<128xf32>
      %25 = vector.shape_cast %24 : vector<128xf32> to vector<1x128xf32>
      %26 = arith.mulf %23, %23 : vector<8x128xf32>
      %cst_17 = arith.constant dense<0.000000e+00> : vector<128xf32>
      %27 = vector.multi_reduction <add>, %26, %cst_17 [0] : vector<8x128xf32> to vector<128xf32>
      %28 = vector.shape_cast %27 : vector<128xf32> to vector<1x128xf32>
      %cst_18 = arith.constant 1.250000e-01 : f32
      %29 = vector.broadcast %cst_18 : f32 to vector<1x128xf32>
      %30 = arith.mulf %25, %29 : vector<1x128xf32>
      %cst_19 = arith.constant 1.250000e-01 : f32
      %31 = vector.broadcast %cst_19 : f32 to vector<1x128xf32>
      %32 = arith.mulf %28, %31 : vector<1x128xf32>
      %33 = arith.mulf %30, %30 : vector<1x128xf32>
      %34 = arith.subf %32, %33 : vector<1x128xf32>
      %c0_20 = arith.constant 0 : index
      %c0_21 = arith.constant 0 : index
      %35 = vector.load %arg5[%c0_20, %c0_21] : memref<1x128xf32, #tpu.memory_space<vmem>>, vector<1x128xf32>
      %cst_22 = arith.constant 9.99999974E-6 : f32
      %36 = vector.broadcast %cst_22 : f32 to vector<1x128xf32>
      %37 = arith.addf %34, %36 : vector<1x128xf32>
      %38 = math.rsqrt %37 : vector<1x128xf32>
      %39 = arith.mulf %35, %38 : vector<1x128xf32>
      %c0_23 = arith.constant 0 : index
      %c0_24 = arith.constant 0 : index
      %40 = vector.load %arg6[%c0_23, %c0_24] : memref<1x128xf32, #tpu.memory_space<vmem>>, vector<1x128xf32>
      %41 = arith.mulf %30, %39 : vector<1x128xf32>
      %42 = arith.subf %40, %41 : vector<1x128xf32>
      %43 = vector.broadcast %39 : vector<1x128xf32> to vector<8x128xf32>
      %44 = arith.mulf %23, %43 : vector<8x128xf32>
      %45 = vector.broadcast %42 : vector<1x128xf32> to vector<8x128xf32>
      %46 = arith.addf %44, %45 : vector<8x128xf32>
      %c0_25 = arith.constant 0 : index
      %c0_26 = arith.constant 0 : index
      %47 = vector.load %arg7[%c0_25, %c0_26] : memref<8x128xf32, #tpu.memory_space<vmem>>, vector<8x128xf32>
      tpu.vector_store %arg7[%c0_25, %c0_26], %46 {strides = array<i32>} : memref<8x128xf32, #tpu.memory_space<vmem>>, vector<8x128xf32>,
    } else {
    }
    return
  }
  func.func @transform_0(%arg0: i32, %arg1: i32) -> (i32, i32) {
    %c0_i32 = arith.constant 0 : i32
    %c0_i32_0 = arith.constant 0 : i32
    return %c0_i32, %arg1 : i32, i32
  }
  func.func @transform_1(%arg0: i32, %arg1: i32) -> (i32, i32) {
    %c0_i32 = arith.constant 0 : i32
    return %arg0, %arg1 : i32, i32
  }
  func.func @transform_2(%arg0: i32, %arg1: i32) -> (i32, i32) {
    %c0_i32 = arith.constant 0 : i32
    %c0_i32_0 = arith.constant 0 : i32
    return %c0_i32, %arg0 : i32, i32
  }
  func.func @transform_3(%arg0: i32, %arg1: i32) -> (i32, i32) {
    %c0_i32 = arith.constant 0 : i32
    %c0_i32_0 = arith.constant 0 : i32
    return %c0_i32, %arg0 : i32, i32
  }
  func.func @transform_4(%arg0: i32, %arg1: i32) -> (i32, i32) {
    %c0_i32 = arith.constant 0 : i32
    %c0_i32_0 = arith.constant 0 : i32
    return %c0_i32, %arg0 : i32, i32
  }
  func.func @transform_5(%arg0: i32, %arg1: i32) -> (i32, i32) {
    %c0_i32 = arith.constant 0 : i32
    %c0_i32_0 = arith.constant 0 : i32
    return %c0_i32, %arg0 : i32, i32
  }
}

</mosaic_0001>

<bundles_post_ra>
// kernel: tpu_custom_call.1
= control target key start
LH: loop header
LB: loop body
LE: loop exit
PB: predicated region body
PF: predicated region fallthrough
CT: control target
= control target key end

     0   :  { %10 = vsyncpa [#allocation4], 0  ;;  %s411_s0 = inlined_call_operand.hbm [shape: bf16[8,128], index: 0, kind: input, shape index: {}]   ;;  %s412_s1 = inlined_call_operand.hbm [shape: bf16[128,128], index: 1, kind: input, shape index: {}]   ;;  %s413_s2 = inlined_call_operand.vmem [shape: f32[1,128], index: 2, kind: input, shape index: {}]   ;;  %s414_s3 = inlined_call_operand.vmem [shape: f32[1,128], index: 3, kind: input, shape index: {}]   ;;  %s415_s4 = inlined_call_operand.vmem [shape: f32[1,128], index: 4, kind: input, shape index: {}]   ;;  %s416_s5 = inlined_call_operand.hbm [shape: f32[8,128], index: 5, kind: output, shape index: {}]  }
   0x1   :  { %11 = vsyncpa [#allocation7], 0 }
   0x2   :  { %12 = vsyncpa [#allocation5], 0  ;;  %s18_s20 = sshll.u32 %s411_s0, 4  ;;  %s358_s21 = smov [#allocation3]   ;;  %s19_s20 = int_to_ptr.hbm [resolvable:$true] %s18_s20 }
   0x3   :  { %s20_s22 = sshll.u32 %s358_s21, 4  ;;  %s28_s25 = sshll.u32 %s412_s1, 4  ;;  %s21_s22 = int_to_ptr.vmem [resolvable:$true] %s20_s22  ;;  %s29_s25 = int_to_ptr.hbm [resolvable:$true] %s28_s25 }
   0x4   :  { %23 = dma.hbm_to_vmem [thread:$0]  %s19_s20, 64, %s21_s22, [#allocation4]  }
   0x5   :  { %s359_s26 = smov [#allocation6]   ;;  %s360_s28 = smov 64  }
   0x6   :  { %s30_s27 = sshll.u32 %s359_s26, 4  ;;  %s361_s29 = smov 4   ;;  %s31_s27 = int_to_ptr.vmem [resolvable:$true] %s30_s27 }
   0x7   :  { %36 = dma.hbm_to_vmem [thread:$0]  %s29_s25, 1024, %s31_s27, [#allocation7], %s360_s28, %s360_s28, %s361_s29  }
   0x8   :  { %352 = dma.done.wait [#allocation4], 64  }
   0x9   :  { %353 = vsyncadd [#allocation4], 4294967232 }
   0xa   :  { %354 = dma.done.wait [#allocation7], 1024  }
   0xb   :  { %355 = vsyncadd [#allocation7], 4294966272  ;;  %v267_v0 = vld [vmem:[#allocation6 + $0x38] sm:$0xff]  ;;  %v266_v1 = vld [vmem:[#allocation6 + $0x30] sm:$0xff]  ;;  %s362_s8 = smov [#allocation8]   ;;  %s216_s12 = sshll.u32 %s416_s5, 4  ;;  %s217_s12 = int_to_ptr.hbm [resolvable:$true] %s216_s12 }
   0xc   :  { %122 = vmatpush.bf16.xpose.msra.mxu0 %v267_v0  ;;  %v265_v2 = vld [vmem:[#allocation6 + $0x28] sm:$0xff]  ;;  %v264_v3 = vld [vmem:[#allocation6 + $0x20] sm:$0xff]  ;;  %v263_v4 = vld [vmem:[#allocation6 + $0x18] sm:$0xff]  ;;  %s214_s9 = sshll.u32 %s362_s8, 4  ;;  %s215_s9 = int_to_ptr.vmem [resolvable:$true] %s214_s9 }
   0xd   :  { %v262_v5 = vld [vmem:[#allocation6 + $0x10] sm:$0xff]  ;;  %v261_v6 = vld [vmem:[#allocation6 + $0x8] sm:$0xff]  ;;  %v260_v7 = vld [vmem:[#allocation6] sm:$0xff] }
   0xe   :  { %v57_v8 = vld [vmem:[#allocation3] sm:$0xf] }
   0xf   :  { %v273_v9 = vld [vmem:[%s413_s2] ss:$0 sm:$0xff] }
  0x10   :  { %v184_v51 = vld [vmem:[%s414_s3] sm:$0x1] }
  0x11   :  { %v197_v55 = vld [vmem:[%s415_s4] sm:$0x1] }
  0x14   :  { %123 = vmatpush.bf16.xpose.msra.mxu0 %v266_v1 }
  0x1c   :  { %124 = vmatpush.bf16.xpose.msra.mxu0 %v265_v2 }
  0x24   :  { %125 = vmatpush.bf16.xpose.msra.mxu0 %v264_v3 }
  0x2c   :  { %126 = vmatpush.bf16.xpose.msra.mxu0 %v263_v4 }
  0x34   :  { %127 = vmatpush.bf16.xpose.msra.mxu0 %v262_v5 }
  0x3c   :  { %128 = vmatpush.bf16.xpose.msra.mxu0 %v261_v6 }
  0x44   :  { %129 = vmatpush.bf16.xpose.msra.mxu0 %v260_v7 }
  0x4b   :  { %130 = vmatmul.bf16.vlgmr.msra.gmra.mxu0 %v57_v8 }
  0xc8   :  { %v131_v10 = vpop.f32.mrf.mxu0 }
  0xc9   :  { %v145_v11 = vadd.f32 %v273_v9, %v131_v10 }
  0xcb   :  { %v259_v12 = vmul.f32 -1.702, %v145_v11 }
  0xcd   :  { %v148_v13 = vmul.f32 1.442695, %v259_v12 }
  0xcf   :  { %274 = vpow2.f32 %v148_v13 }
  0xd0   :  { %v133_v14 = vpop.f32.mrf.mxu0 }
  0xd5   :  { %v275_v15 = vpop.eup %274 }
  0xd6   :  { %v150_v16 = vadd.f32 1.0, %v275_v15 }
  0xd8   :  { %276 = vrcp.f32 %v150_v16  ;;  %v162_v20 = vand.u32 2147483648, %v150_v16  ;;  %v160_v22 = vand.u32 2147483647, %v150_v16  ;;  %vm156_vm1 = vweird.f32 %v150_v16 }
  0xda   :  { %v163_v24 = vor.u32 1.1754944e-38, %v162_v20  ;;  %vm161_vm3 = vcmp.eq.f32.partialorder %v160_v22, 8.507059e+37 }
  0xde   :  { %v277_v17 = vpop.eup %276 }
  0xdf   :  { %v152_v18 = vmul.f32 %v277_v17, %v150_v16  ;;  %vm157_vm0 = vweird.f32 %v277_v17 }
  0xe0   :  { %vm158_vm2 = vmor %vm156_vm1, %vm157_vm0 }
  0xe1   :  { %v153_v19 = vsub.f32 1.0, %v152_v18 }
  0xe3   :  { %v154_v21 = vmul.f32 %v277_v17, %v153_v19 }
  0xe5   :  { %v155_v23 = vadd.f32 %v277_v17, %v154_v21 }
  0xe7   :  { %v159_v25 = vsel %vm158_vm2, %v277_v17, %v155_v23 }
  0xe8   :  { %v164_v26 = vsel %vm161_vm3, %v163_v24, %v159_v25 }
  0xe9   :  { %v166_v27 = vmul.f32 %v164_v26, %v145_v11 }
  0xeb   :  { %v167_v28 = vrot.slane %v166_v27, 4  ;;  %v173_v29 = vmul.f32 %v166_v27, %v166_v27 }
  0xed   :  { %v168_v30 = vadd.f32 %v167_v28, %v166_v27  ;;  %v174_v31 = vrot.slane %v173_v29, 4 }
  0xef   :  { %v169_v32 = vrot.slane %v168_v30, 2  ;;  %v175_v33 = vadd.f32 %v174_v31, %v173_v29 }
  0xf1   :  { %v170_v34 = vadd.f32 %v169_v32, %v168_v30  ;;  %v176_v35 = vrot.slane %v175_v33, 2 }
  0xf3   :  { %v177_v36 = vadd.f32 %v176_v35, %v175_v33  ;;  %v171_v37 = vrot.slane %v170_v34, 1 }
  0xf5   :  { %v178_v38 = vrot.slane %v177_v36, 1  ;;  %v172_v39 = vadd.f32 %v171_v37, %v170_v34 }
  0xf7   :  { %v179_v40 = vadd.f32 %v178_v38, %v177_v36  ;;  %v180_v41 = vmul.f32 0.125, %v172_v39 }
  0xf9   :  { %v181_v42 = vmul.f32 0.125, %v179_v40  ;;  %v182_v43 = vmul.f32 %v180_v41, %v180_v41 }
  0xfb   :  { %v183_v44 = vsub.f32 %v181_v42, %v182_v43 }
  0xfd   :  { %v185_v45 = vadd.f32 1e-05, %v183_v44 }
  0xff   :  { %278 = vrsqrt.f32 %v185_v45  ;;  %vm192_vm5 = vweird.f32 %v185_v45 }
 0x105   :  { %v279_v46 = vpop.eup %278 }
 0x106   :  { %v187_v47 = vmul.f32 %v279_v46, %v185_v45  ;;  %vm193_vm4 = vweird.f32 %v279_v46 }
 0x107   :  { %vm194_vm6 = vmor %vm192_vm5, %vm193_vm4 }
 0x108   :  { %v188_v48 = vmul.f32 %v279_v46, %v187_v47 }
 0x10a   :  { %v189_v49 = vmul.f32 0.5, %v188_v48 }
 0x10c   :  { %v190_v50 = vsub.f32 1.5, %v189_v49 }
 0x10e   :  { %v191_v52 = vmul.f32 %v279_v46, %v190_v50 }
 0x110   :  { %v195_v53 = vsel %vm194_vm6, %v279_v46, %v191_v52 }
 0x111   :  { %v196_v54 = vmul.f32 %v195_v53, %v184_v51 }
 0x113   :  { %v198_v56 = vmul.f32 %v196_v54, %v180_v41  ;;  %v201_v57 = vperm.slane %v196_v54, 0 }
 0x115   :  { %v199_v58 = vsub.f32 %v197_v55, %v198_v56  ;;  %v203_v59 = vmul.f32 %v201_v57, %v166_v27 }
 0x117   :  { %v205_v60 = vperm.slane %v199_v58, 0 }
 0x119   :  { %v207_v61 = vadd.f32 %v205_v60, %v203_v59 }
 0x11b   :  { %208 = vst [vmem:[#allocation8] sm:$0xff] %v207_v61 }
 0x11c   :  { %219 = dma.vmem_to_hbm [thread:$0]  %s215_s9, 128, %s217_s12, [#allocation5]  }
 0x11d   :  { %356 = dma.done.wait [#allocation5], 128  }
 0x11e   :  { %357 = vsyncadd [#allocation5], 4294967168 }
 0x11f   :  { %224 = vsyncpa [#allocation4], 1 }
 0x120   :  { %225 = vsyncpa [#allocation7], 1 }
 0x121   :  { %226 = vsyncpa [#allocation5], 1 }

</bundles_post_ra>
